<compile_context>
chip_gen: v7x
topology: tpu7x:2x2x1
jax: 0.10.0
libtpu: 0.0.40
codegen_flags: <defaults>
</compile_context>

<pallas_src>
import numpy as np
import jax
import jax.numpy as jnp
from jax.experimental import pallas as pl
from jax.experimental.pallas import tpu as pltpu

# Mirrors: _Conv(in_chs=4, out_chs=8, kernel_size=(3, 3), activation_fn='relu',
#                batch_norm=True, pre_activation=True, padding='same')
IN_CHS = 4
OUT_CHS = 8
KERNEL_SIZE = (3, 3)
BN_EPS = 1e-5


def split_padding(kernel_size):
    # Same semantics as SamePadding.split_padding
    if kernel_size % 2 == 0:
        pad_left = int(np.floor((kernel_size - 1) / 2))
        pad_right = int(np.ceil((kernel_size - 1) / 2))
    else:
        pad_left = kernel_size // 2
        pad_right = pad_left
    return pad_left, pad_right


def _make_kernel(N, HW):
    inv_count = 1.0 / float(N * HW)   # BN batch-stat normalizer (N*H*W)

    def kernel(col_ref, w_ref, g_ref, b_ref, o_ref,
               cache_ref, sum_ref, sq_ref, scale_ref, shift_ref):
        # col_ref   : (1, K36, HW)   lane-dense im2col of image n
        # w_ref     : (Cout, K36)    folded conv weight
        # g_ref/b_ref : (Cout, 1)    BN gamma / beta
        # o_ref     : (1, Cout, HW)  lane-dense, NCHW-native output block
        # cache_ref : (N, Cout, HW)  persistent pre-BN cache (VMEM)
        # sum/sq/scale/shift_ref : (Cout, 1) f32 scratch (persist over grid)
        p = pl.program_id(0)   # 0 = conv + stats + cache, 1 = normalize + write
        n = pl.program_id(1)   # image index

        @pl.when(jnp.logical_and(p == 0, n == 0))
        def _():
            sum_ref[...] = jnp.zeros_like(sum_ref)
            sq_ref[...] = jnp.zeros_like(sq_ref)

        @pl.when(p == 0)
        def _():
            # Single fused MXU matmul, result already in (Cout, HW) orientation
            # (no transpose needed downstream).
            y = jnp.dot(w_ref[...], col_ref[0],
                        preferred_element_type=jnp.float32)       # (Cout, HW)
            # Streaming single-pass sum / sum-of-squares (no conv bias: it
            # cancels exactly under the batch-stat BN below).
            sum_ref[...] = sum_ref[...] + jnp.sum(y, axis=1, keepdims=True)
            sq_ref[...] = sq_ref[...] + jnp.sum(y * y, axis=1, keepdims=True)
            cache_ref[n] = y

        @pl.when(jnp.logical_and(p == 1, n == 0))
        def _():
            # Fold gamma/beta + batch stats into one scale/shift, ONCE.
            mean = sum_ref[...] * inv_count                        # (Cout, 1)
            var = jnp.maximum(sq_ref[...] * inv_count - mean * mean, 0.0)
            sc = g_ref[...] * jax.lax.rsqrt(var + BN_EPS)
            scale_ref[...] = sc
            shift_ref[...] = b_ref[...] - mean * sc

        @pl.when(p == 1)
        def _():
            # pre_activation=True -> BN before activation; activation = ReLU.
            y = cache_ref[n]                                       # (Cout, HW)
            o_ref[0] = jnp.maximum(y * scale_ref[...] + shift_ref[...], 0.0)

    return kernel


def conv_forward(x_nchw, weight_oihw, bias, gamma, beta):
    """Forward of _Conv (Conv2d + SamePadding + BatchNorm2d(batch stats) + ReLU,
    pre_activation=True).  `bias` is accepted for interface parity but unused:
    a per-channel constant added before batch-statistics BN cancels exactly."""
    del bias
    N, Cin, H, W = x_nchw.shape
    KH, KW = KERNEL_SIZE
    Cout = weight_oihw.shape[0]
    assert Cin == IN_CHS and Cout == OUT_CHS
    HW = H * W
    K36 = KH * KW * Cin
    pad_t, pad_b = split_padding(KH)
    pad_l, pad_r = split_padding(KW)

    # Glue (one fused XLA pass): SamePadding zero pad + lane-dense im2col.
    xp = jnp.pad(x_nchw.astype(jnp.float32),
                 ((0, 0), (0, 0), (pad_t, pad_b), (pad_l, pad_r)))
    taps = [xp[:, :, kh:kh + H, kw:kw + W]
            for kh in range(KH) for kw in range(KW)]
    col = jnp.stack(taps, axis=1).reshape(N, K36, HW)      # (N, 36, H*W)

    # (Cout, Cin, KH, KW) -> (Cout, KH*KW*Cin), matching col's (tap, ci) rows.
    w = jnp.transpose(weight_oihw, (0, 2, 3, 1)).reshape(Cout, K36)
    w = w.astype(jnp.float32)
    g = gamma.reshape(Cout, 1).astype(jnp.float32)
    b = beta.reshape(Cout, 1).astype(jnp.float32)

    # Persistent pre-BN cache must fit scoped VMEM (sized against v7x).
    cache_bytes = N * Cout * HW * 4
    assert cache_bytes <= 24 * 1024 * 1024, "pre-BN VMEM cache too large"

    out_flat = pl.pallas_call(
        _make_kernel(N, HW),
        out_shape=jax.ShapeDtypeStruct((N, Cout, HW), jnp.float32),
        grid_spec=pltpu.PrefetchScalarGridSpec(
            num_scalar_prefetch=0,
            grid=(2, N),
            in_specs=[
                # Pass 0 streams image n; pass 1 pins the last block so no
                # fresh input DMAs are issued while reading the VMEM cache.
                pl.BlockSpec((1, K36, HW),
                             lambda p, n: ((1 - p) * n + p * (N - 1), 0, 0)),
                pl.BlockSpec((Cout, K36), lambda p, n: (0, 0)),
                pl.BlockSpec((Cout, 1), lambda p, n: (0, 0)),
                pl.BlockSpec((Cout, 1), lambda p, n: (0, 0)),
            ],
            # p*n keeps output block 0 resident across all of pass 0 (output
            # writeback only occurs on block-index change), so the
            # never-written pass-0 block is never flushed; pass 1 writes block
            # n for real.  Documented revisit/writeback semantics.
            out_specs=pl.BlockSpec((1, Cout, HW), lambda p, n: (p * n, 0, 0)),
            scratch_shapes=[
                pltpu.VMEM((N, Cout, HW), jnp.float32),   # pre-BN cache
                pltpu.VMEM((Cout, 1), jnp.float32),       # sum
                pltpu.VMEM((Cout, 1), jnp.float32),       # sum of squares
                pltpu.VMEM((Cout, 1), jnp.float32),       # folded BN scale
                pltpu.VMEM((Cout, 1), jnp.float32),       # folded BN shift
            ],
        ),
        compiler_params=pltpu.CompilerParams(
            # Stats accumulate sequentially across the whole grid.
            dimension_semantics=("arbitrary", "arbitrary"),
            vmem_limit_bytes=32 * 1024 * 1024,
        ),
    )(col, w, g, b)

    # NCHW-native lane-dense output: reshape only, no transpose.
    return out_flat.reshape(N, Cout, H, W)


if __name__ == "__main__":
    key = jax.random.PRNGKey(0)
    k_x, k_w, k_b = jax.random.split(key, 3)

    N, H, W = 2, 16, 16
    x = jax.random.normal(k_x, (N, IN_CHS, H, W), dtype=jnp.float32)

    # Deterministic parameter init (Conv2d-like uniform bounds; BN defaults).
    fan_in = IN_CHS * KERNEL_SIZE[0] * KERNEL_SIZE[1]
    bound = 1.0 / float(np.sqrt(fan_in))
    weight = jax.random.uniform(
        k_w, (OUT_CHS, IN_CHS, KERNEL_SIZE[0], KERNEL_SIZE[1]),
        dtype=jnp.float32, minval=-bound, maxval=bound)
    bias = jax.random.uniform(k_b, (OUT_CHS,), dtype=jnp.float32,
                              minval=-bound, maxval=bound)
    gamma = jnp.ones((OUT_CHS,), jnp.float32)   # BatchNorm weight init
    beta = jnp.zeros((OUT_CHS,), jnp.float32)   # BatchNorm bias init

    out = jax.block_until_ready(conv_forward(x, weight, bias, gamma, beta))

    # Pure-JAX reference (conv + bias + batch-stat BN + ReLU, pre-activation).
    pad_t, pad_b = split_padding(KERNEL_SIZE[0])
    pad_l, pad_r = split_padding(KERNEL_SIZE[1])
    y_ref = jax.lax.conv_general_dilated(
        x, weight, window_strides=(1, 1),
        padding=((pad_t, pad_b), (pad_l, pad_r)),
        dimension_numbers=("NCHW", "OIHW", "NCHW"))
    y_ref = y_ref + bias[None, :, None, None]
    mean = y_ref.mean(axis=(0, 2, 3), keepdims=True)
    var = ((y_ref - mean) ** 2).mean(axis=(0, 2, 3), keepdims=True)
    y_ref = (y_ref - mean) / jnp.sqrt(var + BN_EPS)
    y_ref = y_ref * gamma[None, :, None, None] + beta[None, :, None, None]
    y_ref = jnp.maximum(y_ref, 0.0)

    np.testing.assert_allclose(np.asarray(out), np.asarray(y_ref),
                               rtol=1e-4, atol=1e-4)
    print("KERNEL_OK")
</pallas_src>

<mosaic_0001>
module attributes {stable_mosaic.version = 11 : i64} {
  func.func @kernel(%arg0: i32, %arg1: i32, %arg2: memref<1x36x256xf32, #tpu.memory_space<vmem>>, %arg3: memref<8x36xf32, #tpu.memory_space<vmem>>, %arg4: memref<8x1xf32, #tpu.memory_space<vmem>>, %arg5: memref<8x1xf32, #tpu.memory_space<vmem>>, %arg6: memref<1x8x256xf32, #tpu.memory_space<vmem>>, %arg7: memref<2x8x256xf32, #tpu.memory_space<vmem>>, %arg8: memref<8x1xf32, #tpu.memory_space<vmem>>, %arg9: memref<8x1xf32, #tpu.memory_space<vmem>>, %arg10: memref<8x1xf32, #tpu.memory_space<vmem>>, %arg11: memref<8x1xf32, #tpu.memory_space<vmem>>) attributes {dimension_semantics = [#tpu.dimension_semantics<arbitrary>, #tpu.dimension_semantics<arbitrary>], iteration_bounds = array<i64: 2, 2>, scalar_prefetch = 0 : i64, scratch_operands = 5 : i64, tpu.core_type = #tpu.core_type<tc>, window_params = [{transform_indices = @transform_0, window_bounds = array<i64: 1, 36, 256>}, {pipeline_mode = #tpu.pipeline_mode<synchronous>, transform_indices = @transform_1, window_bounds = array<i64: 8, 36>}, {pipeline_mode = #tpu.pipeline_mode<synchronous>, transform_indices = @transform_2, window_bounds = array<i64: 8, 1>}, {pipeline_mode = #tpu.pipeline_mode<synchronous>, transform_indices = @transform_3, window_bounds = array<i64: 8, 1>}, {transform_indices = @transform_4, window_bounds = array<i64: 1, 8, 256>}]} {
    %c0_i32 = arith.constant 0 : i32
    %0 = arith.cmpi eq, %arg0, %c0_i32 : i32
    %c0_i32_0 = arith.constant 0 : i32
    %1 = arith.cmpi eq, %arg1, %c0_i32_0 : i32
    %2 = arith.andi %0, %1 : i1
    %3 = arith.extui %2 : i1 to i32
    %c0_i32_1 = arith.constant 0 : i32
    %4 = arith.cmpi ne, %3, %c0_i32_1 : i32
    scf.if %4 {
      %cst = arith.constant 0.000000e+00 : f32
      %16 = vector.broadcast %cst : f32 to vector<8x1xf32>
      %c0 = arith.constant 0 : index
      %c0_8 = arith.constant 0 : index
      %17 = vector.load %arg8[%c0, %c0_8] : memref<8x1xf32, #tpu.memory_space<vmem>>, vector<8x1xf32>
      tpu.vector_store %arg8[%c0, %c0_8], %16 {strides = array<i32>} : memref<8x1xf32, #tpu.memory_space<vmem>>, vector<8x1xf32>,
      %cst_9 = arith.constant 0.000000e+00 : f32
      %18 = vector.broadcast %cst_9 : f32 to vector<8x1xf32>
      %c0_10 = arith.constant 0 : index
      %c0_11 = arith.constant 0 : index
      %19 = vector.load %arg9[%c0_10, %c0_11] : memref<8x1xf32, #tpu.memory_space<vmem>>, vector<8x1xf32>
      tpu.vector_store %arg9[%c0_10, %c0_11], %18 {strides = array<i32>} : memref<8x1xf32, #tpu.memory_space<vmem>>, vector<8x1xf32>,
    } else {
    }
    %c0_i32_2 = arith.constant 0 : i32
    %5 = arith.cmpi eq, %arg0, %c0_i32_2 : i32
    %6 = arith.extui %5 : i1 to i32
    %c0_i32_3 = arith.constant 0 : i32
    %7 = arith.cmpi ne, %6, %c0_i32_3 : i32
    scf.if %7 {
      %c0 = arith.constant 0 : index
      %c0_8 = arith.constant 0 : index
      %16 = vector.load %arg3[%c0, %c0_8] : memref<8x36xf32, #tpu.memory_space<vmem>>, vector<8x36xf32>
      %c0_9 = arith.constant 0 : index
      %c0_10 = arith.constant 0 : index
      %c0_11 = arith.constant 0 : index
      %17 = vector.load %arg2[%c0_9, %c0_10, %c0_11] : memref<1x36x256xf32, #tpu.memory_space<vmem>>, vector<1x36x256xf32>
      %18 = vector.shape_cast %17 : vector<1x36x256xf32> to vector<36x256xf32>
      %cst = arith.constant dense<0.000000e+00> : vector<8x256xf32>
      %19 = tpu.matmul %16, %18, %cst {dimension_numbers = #tpu.dot_dimension_numbers<[1], [0], [0], [1], [0, 0, 1, 1], [], []>} : vector<8x36xf32>, vector<36x256xf32>, vector<8x256xf32> -> vector<8x256xf32>
      %c0_12 = arith.constant 0 : index
      %c0_13 = arith.constant 0 : index
      %20 = vector.load %arg8[%c0_12, %c0_13] : memref<8x1xf32, #tpu.memory_space<vmem>>, vector<8x1xf32>
      %cst_14 = arith.constant dense<0.000000e+00> : vector<8xf32>
      %21 = vector.multi_reduction <add>, %19, %cst_14 [1] : vector<8x256xf32> to vector<8xf32>
      %22 = vector.shape_cast %21 : vector<8xf32> to vector<8x1xf32>
      %23 = arith.addf %20, %22 : vector<8x1xf32>
      %c0_15 = arith.constant 0 : index
      %c0_16 = arith.constant 0 : index
      %24 = vector.load %arg8[%c0_15, %c0_16] : memref<8x1xf32, #tpu.memory_space<vmem>>, vector<8x1xf32>
      tpu.vector_store %arg8[%c0_15, %c0_16], %23 {strides = array<i32>} : memref<8x1xf32, #tpu.memory_space<vmem>>, vector<8x1xf32>,
      %c0_17 = arith.constant 0 : index
      %c0_18 = arith.constant 0 : index
      %25 = vector.load %arg9[%c0_17, %c0_18] : memref<8x1xf32, #tpu.memory_space<vmem>>, vector<8x1xf32>
      %26 = arith.mulf %19, %19 : vector<8x256xf32>
      %cst_19 = arith.constant dense<0.000000e+00> : vector<8xf32>
      %27 = vector.multi_reduction <add>, %26, %cst_19 [1] : vector<8x256xf32> to vector<8xf32>
      %28 = vector.shape_cast %27 : vector<8xf32> to vector<8x1xf32>
      %29 = arith.addf %25, %28 : vector<8x1xf32>
      %c0_20 = arith.constant 0 : index
      %c0_21 = arith.constant 0 : index
      %30 = vector.load %arg9[%c0_20, %c0_21] : memref<8x1xf32, #tpu.memory_space<vmem>>, vector<8x1xf32>
      tpu.vector_store %arg9[%c0_20, %c0_21], %29 {strides = array<i32>} : memref<8x1xf32, #tpu.memory_space<vmem>>, vector<8x1xf32>,
      %31 = arith.index_cast %arg1 : i32 to index
      %c0_22 = arith.constant 0 : index
      %c0_23 = arith.constant 0 : index
      %32 = vector.load %arg7[%31, %c0_22, %c0_23] : memref<2x8x256xf32, #tpu.memory_space<vmem>>, vector<1x8x256xf32>
      %33 = vector.shape_cast %32 : vector<1x8x256xf32> to vector<8x256xf32>
      %34 = vector.shape_cast %19 : vector<8x256xf32> to vector<1x8x256xf32>
      tpu.vector_store %arg7[%31, %c0_22, %c0_23], %34 {strides = array<i32>} : memref<2x8x256xf32, #tpu.memory_space<vmem>>, vector<1x8x256xf32>,
    } else {
    }
    %c1_i32 = arith.constant 1 : i32
    %8 = arith.cmpi eq, %arg0, %c1_i32 : i32
    %c0_i32_4 = arith.constant 0 : i32
    %9 = arith.cmpi eq, %arg1, %c0_i32_4 : i32
    %10 = arith.andi %8, %9 : i1
    %11 = arith.extui %10 : i1 to i32
    %c0_i32_5 = arith.constant 0 : i32
    %12 = arith.cmpi ne, %11, %c0_i32_5 : i32
    scf.if %12 {
      %c0 = arith.constant 0 : index
      %c0_8 = arith.constant 0 : index
      %16 = vector.load %arg8[%c0, %c0_8] : memref<8x1xf32, #tpu.memory_space<vmem>>, vector<8x1xf32>
      %cst = arith.constant 0.001953125 : f32
      %17 = vector.broadcast %cst : f32 to vector<8x1xf32>
      %18 = arith.mulf %16, %17 : vector<8x1xf32>
      %c0_9 = arith.constant 0 : index
      %c0_10 = arith.constant 0 : index
      %19 = vector.load %arg9[%c0_9, %c0_10] : memref<8x1xf32, #tpu.memory_space<vmem>>, vector<8x1xf32>
      %cst_11 = arith.constant 0.001953125 : f32
      %20 = vector.broadcast %cst_11 : f32 to vector<8x1xf32>
      %21 = arith.mulf %19, %20 : vector<8x1xf32>
      %22 = arith.mulf %18, %18 : vector<8x1xf32>
      %23 = arith.subf %21, %22 : vector<8x1xf32>
      %cst_12 = arith.constant 0.000000e+00 : f32
      %24 = vector.broadcast %cst_12 : f32 to vector<8x1xf32>
      %25 = arith.maximumf %23, %24 : vector<8x1xf32>
      %c0_13 = arith.constant 0 : index
      %c0_14 = arith.constant 0 : index
      %26 = vector.load %arg4[%c0_13, %c0_14] : memref<8x1xf32, #tpu.memory_space<vmem>>, vector<8x1xf32>
      %cst_15 = arith.constant 9.99999974E-6 : f32
      %27 = vector.broadcast %cst_15 : f32 to vector<8x1xf32>
      %28 = arith.addf %25, %27 : vector<8x1xf32>
      %29 = math.rsqrt %28 : vector<8x1xf32>
      %30 = arith.mulf %26, %29 : vector<8x1xf32>
      %c0_16 = arith.constant 0 : index
      %c0_17 = arith.constant 0 : index
      %31 = vector.load %arg10[%c0_16, %c0_17] : memref<8x1xf32, #tpu.memory_space<vmem>>, vector<8x1xf32>
      tpu.vector_store %arg10[%c0_16, %c0_17], %30 {strides = array<i32>} : memref<8x1xf32, #tpu.memory_space<vmem>>, vector<8x1xf32>,
      %c0_18 = arith.constant 0 : index
      %c0_19 = arith.constant 0 : index
      %32 = vector.load %arg5[%c0_18, %c0_19] : memref<8x1xf32, #tpu.memory_space<vmem>>, vector<8x1xf32>
      %33 = arith.mulf %18, %30 : vector<8x1xf32>
      %34 = arith.subf %32, %33 : vector<8x1xf32>
      %c0_20 = arith.constant 0 : index
      %c0_21 = arith.constant 0 : index
      %35 = vector.load %arg11[%c0_20, %c0_21] : memref<8x1xf32, #tpu.memory_space<vmem>>, vector<8x1xf32>
      tpu.vector_store %arg11[%c0_20, %c0_21], %34 {strides = array<i32>} : memref<8x1xf32, #tpu.memory_space<vmem>>, vector<8x1xf32>,
    } else {
    }
    %c1_i32_6 = arith.constant 1 : i32
    %13 = arith.cmpi eq, %arg0, %c1_i32_6 : i32
    %14 = arith.extui %13 : i1 to i32
    %c0_i32_7 = arith.constant 0 : i32
    %15 = arith.cmpi ne, %14, %c0_i32_7 : i32
    scf.if %15 {
      %16 = arith.index_cast %arg1 : i32 to index
      %c0 = arith.constant 0 : index
      %c0_8 = arith.constant 0 : index
      %17 = vector.load %arg7[%16, %c0, %c0_8] : memref<2x8x256xf32, #tpu.memory_space<vmem>>, vector<1x8x256xf32>
      %18 = vector.shape_cast %17 : vector<1x8x256xf32> to vector<8x256xf32>
      %c0_9 = arith.constant 0 : index
      %c0_10 = arith.constant 0 : index
      %19 = vector.load %arg10[%c0_9, %c0_10] : memref<8x1xf32, #tpu.memory_space<vmem>>, vector<8x1xf32>
      %20 = vector.broadcast %19 : vector<8x1xf32> to vector<8x256xf32>
      %21 = arith.mulf %18, %20 : vector<8x256xf32>
      %c0_11 = arith.constant 0 : index
      %c0_12 = arith.constant 0 : index
      %22 = vector.load %arg11[%c0_11, %c0_12] : memref<8x1xf32, #tpu.memory_space<vmem>>, vector<8x1xf32>
      %23 = vector.broadcast %22 : vector<8x1xf32> to vector<8x256xf32>
      %24 = arith.addf %21, %23 : vector<8x256xf32>
      %cst = arith.constant 0.000000e+00 : f32
      %25 = vector.broadcast %cst : f32 to vector<8x256xf32>
      %26 = arith.maximumf %24, %25 : vector<8x256xf32>
      %c0_13 = arith.constant 0 : index
      %c0_14 = arith.constant 0 : index
      %c0_15 = arith.constant 0 : index
      %27 = vector.load %arg6[%c0_13, %c0_14, %c0_15] : memref<1x8x256xf32, #tpu.memory_space<vmem>>, vector<1x8x256xf32>
      %28 = vector.shape_cast %27 : vector<1x8x256xf32> to vector<8x256xf32>
      %29 = vector.shape_cast %26 : vector<8x256xf32> to vector<1x8x256xf32>
      tpu.vector_store %arg6[%c0_13, %c0_14, %c0_15], %29 {strides = array<i32>} : memref<1x8x256xf32, #tpu.memory_space<vmem>>, vector<1x8x256xf32>,
    } else {
    }
    return
  }
  func.func @transform_0(%arg0: i32, %arg1: i32) -> (i32, i32, i32) {
    %c1_i32 = arith.constant 1 : i32
    %0 = arith.subi %c1_i32, %arg0 : i32
    %1 = arith.muli %0, %arg1 : i32
    %c1_i32_0 = arith.constant 1 : i32
    %2 = arith.muli %arg0, %c1_i32_0 : i32
    %3 = arith.addi %1, %2 : i32
    %c0_i32 = arith.constant 0 : i32
    %c0_i32_1 = arith.constant 0 : i32
    %c0_i32_2 = arith.constant 0 : i32
    return %3, %c0_i32, %c0_i32_1 : i32, i32, i32
  }
  func.func @transform_1(%arg0: i32, %arg1: i32) -> (i32, i32) {
    %c0_i32 = arith.constant 0 : i32
    %c0_i32_0 = arith.constant 0 : i32
    %c0_i32_1 = arith.constant 0 : i32
    return %c0_i32, %c0_i32_0 : i32, i32
  }
  func.func @transform_2(%arg0: i32, %arg1: i32) -> (i32, i32) {
    %c0_i32 = arith.constant 0 : i32
    %c0_i32_0 = arith.constant 0 : i32
    %c0_i32_1 = arith.constant 0 : i32
    return %c0_i32, %c0_i32_0 : i32, i32
  }
  func.func @transform_3(%arg0: i32, %arg1: i32) -> (i32, i32) {
    %c0_i32 = arith.constant 0 : i32
    %c0_i32_0 = arith.constant 0 : i32
    %c0_i32_1 = arith.constant 0 : i32
    return %c0_i32, %c0_i32_0 : i32, i32
  }
  func.func @transform_4(%arg0: i32, %arg1: i32) -> (i32, i32, i32) {
    %0 = arith.muli %arg0, %arg1 : i32
    %c0_i32 = arith.constant 0 : i32
    %c0_i32_0 = arith.constant 0 : i32
    %c0_i32_1 = arith.constant 0 : i32
    return %0, %c0_i32, %c0_i32_0 : i32, i32, i32
  }
}

</mosaic_0001>

<bundles_post_ra>
// kernel: tpu_custom_call.1
= control target key start
LH: loop header
LB: loop body
LE: loop exit
PB: predicated region body
PF: predicated region fallthrough
CT: control target
= control target key end

     0   :  { %9 = vsyncpa [#allocation8], 0  ;;  %s902_s0 = inlined_call_operand.vmem [shape: f32[2,36,256], index: 0, kind: input, shape index: {}]   ;;  %s903_s1 = inlined_call_operand.vmem [shape: f32[8,36], index: 1, kind: input, shape index: {}]   ;;  %s904_s2 = inlined_call_operand.vmem [shape: f32[8,1], index: 2, kind: input, shape index: {}]   ;;  %s905_s3 = inlined_call_operand.vmem [shape: f32[8,1], index: 3, kind: input, shape index: {}]   ;;  %s906_s4 = inlined_call_operand.hbm [shape: f32[2,8,256], index: 4, kind: output, shape index: {}]  }
   0x1   :  { %11 = vsyncpa [#allocation8 + $0x1], 0  ;;  %s732_s15 = smov 0   ;;  %s734_s16 = smov 0  }
   0x2   :  { %s736_s17 = smov 0   ;;  %s738_s18 = smov 0  }
   0x3   :  { %s740_s19 = smov 0   ;;  %s742_s20 = smov 0  }
   0x4   :  { %s744_s21 = smov 0   ;;  %s746_s22 = smov 0  }
   0x5 LB: > { %s497_s23 = sadd.s32 4294967295, %s701_s22   ;;  %s498_s24 = sadd.s32 4294967294, %s701_s22   ;;  %s701_s22 = sphi %s746_s22, %s17_s22   ;;  %s697_s21 = sphi %s744_s21, %s915_s21   ;;  %s693_s20 = sphi %s742_s20, %s914_s20   ;;  %s689_s19 = sphi %s740_s19, %s913_s19   ;;  %s685_s18 = sphi %s738_s18, %s912_s18   ;;  %s681_s17 = sphi %s736_s17, %s911_s17   ;;  %s677_s16 = sphi %s734_s16, %s910_s16   ;;  %s673_s15 = sphi %s732_s15, %s909_s15  }
   0x6   : > { %s26_s25 = sadd.s32 1, %s693_s20  ;;  %s29_s26 = sadd.s32 1, %s697_s21 }
   0x7   : > { %p27_p0 = scmp.ge.s32.totalorder %s26_s25, 2  ;;  %s128_s27 = smul.u32 %s693_s20, %s697_s21 }
   0x8   : > { %p143_p1 = scmp.ne.s32.totalorder %s681_s17, %s677_s16  ;;  %p144_p2 = scmp.eq.s32.totalorder %s497_s23, 3 }
   0x9   : > { %s917_s25 = smov (%p27_p0, %s26_s25), 0  ;;  %s919_s26 = smov (!%p27_p0, %s29_s26), %s697_s21 }
   0xa   : > { %p149_p3 = scmp.ne.s32.totalorder %s677_s16, %s673_s15  ;;  %p31_p4 = scmp.ge.s32.totalorder %s919_s26, 2 }
   0xb   : > { %p150_p5 = scmp.eq.s32.totalorder %s498_s24, 3  ;;  %p785_p6 = por %p144_p2, %p143_p1 }
   0xc   : > { %p501_p7 = scmp.ge.s32.totalorder %s701_s22, 1  ;;  %s921_s26 = smov (%p31_p4, %s919_s26), 0 }
   0xd   : > { %p792_p8 = por %p150_p5, %p149_p3  ;;  %p191_p9 = scmp.lt.s32.totalorder %s701_s22, 5 }
   0xe   : > { %s129_s30 = smul.u32 %s921_s26, %s917_s25  ;;  %s133_s6 = sadd.s32 1, %s681_s17 }
   0xf   : > { %p192_p10 = pnand %p501_p7, %p191_p9 }
  0x10   : > { %s130_s5 = ssub.s32 %s128_s27, %s129_s30  ;;  %s217_s8 = sand.u32 (!%p192_p10), 1, %s677_s16  }
  0x11   : > { %p131_p11 = scmp.eq.s32.totalorder %s130_s5, 0  ;;  %195 = sbr.rel (%p192_p10) target bundleno = 608 (0x260), region = 36 }
  0x12   : > { %s220_s9 = ssub.s32 (!%p192_p10), 1, %s689_s19  ;;  %s502_s10 = sshll.u32 (!%p192_p10), %s217_s8, 4 }
  0x13   : > { %s801_s7 = scalar_select %p131_p11, %s681_s17, %s133_s6  }
  0x14   : > { %s221_s11 = smul.u32 (!%p192_p10), %s685_s18, %s220_s9  ;;  %p232_p12 = scmp.eq.s32.totalorder (!%p192_p10), %s689_s19, 0 }
  0x15   : > { %p233_p13 = scmp.eq.s32.totalorder (!%p192_p10), %s685_s18, 0  ;;  %s818_s27 = scalar_lea.vmem (!%p192_p10), [#allocation7], %s502_s10 }
  0x16   : > { %s222_s12 = sadd.s32 (!%p192_p10), %s689_s19, %s221_s11 }
  0x17   : > { %p223_p0 = scmp.lt.s32.totalorder (!%p192_p10), %s222_s12, 1  ;;  %p234_p1 = pnand (!%p192_p10), %p233_p13, %p232_p12 }
  0x18   : > { %vm238_vm0 = vcmask (!%p234_p1), 7168   ;;  %v703_v0 = vmov (!%p234_p1), 0.0  }
  0x19   : > { %s923_s12 = smov (!%p223_p0, %s222_s12), 1  ;;  %237 = sbr.rel (%p234_p1) target bundleno = 32 (0x20), region = 40 }
  0x1a   : > { %s529_s13 = smul.u32 80, %s923_s12  ;;  %239 = vst.msk [vmem:[#allocation3] sm:$0xff] (!%p234_p1), %vm238_vm0, %v703_v0  ;;  %240 = vst.msk [vmem:[#allocation4] sm:$0xff] (!%p234_p1), %vm238_vm0, %v703_v0 }
  0x1c   : > { %s816_s24 = scalar_lea.vmem %s902_s0, %s529_s13 }
  0x20 PF: > { %p504_p2 = scmp.ne.s32.totalorder %s689_s19, 0 }
  0x21   : > { %v246_v1 = vld [vmem:[%s816_s24 + $0x8] sm:$0xff] (!%p504_p2)  ;;  %v248_v2 = vld [vmem:[%s816_s24 + $0x18] sm:$0xff] (!%p504_p2)  ;;  %v245_v3 = vld [vmem:[%s816_s24] sm:$0xff] (!%p504_p2)  ;;  %v704_v8 = vmov (!%p504_p2), 0.0   ;;  %vm259_vm1 = vcmask (!%p504_p2), 1043456   ;;  %vm255_vm2 = vcmask (!%p504_p2), 293888  }
  0x22   : > { %243 = sbr.rel (%p504_p2) target bundleno = 410 (0x19a), region = 44  ;;  %v521_v4 = vpack.c.bf16 (!%p504_p2), %v248_v2, %v246_v1  ;;  %v247_v5 = vld [vmem:[%s816_s24 + $0x10] sm:$0xff] (!%p504_p2)  ;;  %v250_v6 = vld [vmem:[%s816_s24 + $0x28] sm:$0xff] (!%p504_p2)  ;;  %v252_v7 = vld [vmem:[%s816_s24 + $0x38] sm:$0xff] (!%p504_p2)  ;;  %330 = vmatprep.mubr.f32.mxu0 (!%p504_p2), %v704_v8  ;;  %s518_s6 = sshll.u32 (!%p504_p2), %s685_s18, 4  ;;  %vm342_vm3 = vcmask (!%p504_p2), 7168  }
  0x23   : > { %v523_v9 = vpack.c.bf16 (!%p504_p2), %v247_v5, %v245_v3  ;;  %v525_v10 = vpack.c.bf16 (!%p504_p2), %v252_v7, %v250_v6  ;;  %v249_v11 = vld [vmem:[%s816_s24 + $0x20] sm:$0xff] (!%p504_p2)  ;;  %v251_v12 = vld [vmem:[%s816_s24 + $0x30] sm:$0xff] (!%p504_p2)  ;;  %v254_v14 = vld [vmem:[%s816_s24 + $0x48] sm:$0xf] (!%p504_p2)  ;;  %s354_s9 = scalar_lea.vmem (!%p504_p2), [#allocation2], %s518_s6 }
  0x24   : > { %522 = vmatprep.subr.bf16.mxu0 (!%p504_p2), %v521_v4  ;;  %v527_v13 = vpack.c.bf16 (!%p504_p2), %v251_v12, %v249_v11  ;;  %v253_v15 = vld [vmem:[%s816_s24 + $0x40] sm:$0xf] (!%p504_p2)  ;;  %v344_v26 = vld [vmem:[#allocation4] sm:$0xff] (!%p504_p2) }
  0x25   : > { %524 = vmatpush1.bf16.msra.mxu0 (!%p504_p2), %v523_v9  ;;  %v244_v16 = vld [vmem:[%s903_s1] sm:$0xff] (!%p504_p2) }
  0x26   : > { %526 = vmatprep.subr.bf16.mxu0 (!%p504_p2), %v525_v10  ;;  %v337_v23 = vld [vmem:[#allocation3] sm:$0xff] (!%p504_p2) }
  0x29   : > { %528 = vmatpush1.bf16.msra.mxu0 %v527_v13 }
  0x2a   : > { %505 = vmatprep.subr.msk.mxu0 %vm259_vm1, %v254_v14 }
  0x2d   : > { %506 = vmatpush1.msk.msra.mxu0 %vm259_vm1, %v253_v15 }
  0x2e   : > { %507 = vmatmul.mubr.msk.f32.vlgmr.msra.gmra.mrb[0].mxu0 %vm255_vm2, %v244_v16 }
 0x101   : > { %v332_v17 = vpop.f32.mrb[0].mxu0 }
 0x102   : > { %v334_v18 = vpop.f32.mrb[1].mxu0  ;;  %355 = vst [vmem:[%s354_s9] sm:$0xff] %v332_v17  ;;  %v345_v19 = vmul.f32 %v332_v17, %v332_v17 }
 0x103   : > { %v346_v20 = vmul.f32 %v334_v18, %v334_v18  ;;  %356 = vst [vmem:[%s354_s9 + $0x8] sm:$0xff] %v334_v18  ;;  %v338_v21 = vadd.f32 %v334_v18, %v332_v17 }
 0x105   : > { %339 = vadd.xlane.f32.xlu0 %v338_v21  ;;  %v347_v22 = vadd.f32 %v346_v20, %v345_v19 }
 0x109   : > { %348 = vadd.xlane.f32.xlu0 %v347_v22 }
 0x192   : > { %v340_v24 = vpop.xlane.xlu0 %339 }
 0x193   : > { %v341_v25 = vadd.f32 %v340_v24, %v337_v23 }
 0x195   : > { %343 = vst.msk [vmem:[#allocation3] sm:$0xff] %vm342_vm3, %v341_v25 }
 0x196   : > { %v349_v27 = vpop.xlane.xlu0 %348 }
 0x197   : > { %v350_v28 = vadd.f32 %v349_v27, %v344_v26 }
 0x199   : > { %351 = vst.msk [vmem:[#allocation4] sm:$0xff] %vm342_vm3, %v350_v28 }
 0x19a PF: > { %p357_p3 = scmp.eq.s32.totalorder %s689_s19, 1 }
 0x19c   : > { %p358_p4 = pnand %p357_p3, %p233_p13 }
 0x19d   : > { %v362_v29 = vld [vmem:[#allocation3] sm:$0xff] (!%p358_p4)  ;;  %vm373_vm4 = vcmask (!%p358_p4), 7168  }
 0x19e   : > { %361 = sbr.rel (%p358_p4) target bundleno = 443 (0x1bb), region = 48  ;;  %v363_v31 = vmul.f32 (!%p358_p4), 0.001953125, %v362_v29  ;;  %v369_v37 = vld [vmem:[%s904_s2] sm:$0xff] (!%p358_p4) }
 0x19f   : > { %v375_v40 = vld [vmem:[%s905_s3] sm:$0xff] (!%p358_p4) }
 0x1a0   : > { %v364_v30 = vld [vmem:[#allocation4] sm:$0xff] (!%p358_p4)  ;;  %v366_v33 = vmul.f32 (!%p358_p4), %v363_v31, %v363_v31 }
 0x1a1   : > { %v365_v32 = vmul.f32 (!%p358_p4), 0.001953125, %v364_v30 }
 0x1a3   : > { %v367_v34 = vsub.f32 (!%p358_p4), %v365_v32, %v366_v33 }
 0x1a5   : > { %v368_v35 = vmax.f32 %v367_v34, 0.0 }
 0x1a7   : > { %v370_v36 = vadd.f32 1e-05, %v368_v35 }
 0x1a9   : > { %604 = vrsqrt.f32 %v370_v36 }
 0x1b3   : > { %v605_v38 = vpop.eup %604 }
 0x1b4   : > { %v372_v39 = vmul.f32 %v605_v38, %v369_v37 }
 0x1b6   : > { %374 = vst.msk [vmem:[#allocation5] sm:$0xff] %vm373_vm4, %v372_v39  ;;  %v376_v41 = vmul.f32 %v372_v39, %v363_v31 }
 0x1b8   : > { %v377_v42 = vsub.f32 %v375_v40, %v376_v41 }
 0x1ba   : > { %378 = vst.msk [vmem:[#allocation6] sm:$0xff] %vm373_vm4, %v377_v42 }
 0x1bb PF: > { %p510_p5 = scmp.ne.s32.totalorder %s689_s19, 1 }
 0x1bc   : > { %v705_v44 = vmov (!%p510_p5), 0   ;;  %s519_s14 = sshll.u32 (!%p510_p5), %s685_s18, 4 }
 0x1bd   : > { %381 = sbr.rel (%p510_p5) target bundleno = 583 (0x247), region = 52  ;;  %v387_v43 = vld [vmem:[#allocation5] sm:$0xff] (!%p510_p5)  ;;  %606 = vset.pattern.permute.xlu0 (!%p510_p5), %v705_v44  ;;  %s384_s23 = scalar_lea.vmem (!%p510_p5), [#allocation2], %s519_s14 }
 0x1be   : > { %390 = vperm.xlu0 (!%p510_p5), %606, %v387_v43   ;;  %v385_v47 = vld [vmem:[%s384_s23] sm:$0xff] (!%p510_p5)  ;;  %v386_v48 = vld [vmem:[%s384_s23 + $0x8] sm:$0xff] (!%p510_p5) }
 0x1c1   : > { %v395_v45 = vld [vmem:[#allocation6] sm:$0xff] (!%p510_p5) }
 0x1c2   : > { %398 = vperm.xlu0 (!%p510_p5), %606, %v395_v45  }
 0x23d   : > { %v391_v46 = vpop.permute.xlu0 %390 }
 0x23e   : > { %v393_v49 = vmul.f32 %v391_v46, %v385_v47  ;;  %v394_v50 = vmul.f32 %v391_v46, %v386_v48 }
 0x241   : > { %v399_v51 = vpop.permute.xlu0 %398 }
 0x242   : > { %v401_v52 = vadd.f32 %v399_v51, %v393_v49  ;;  %v402_v53 = vadd.f32 %v399_v51, %v394_v50 }
 0x244   : > { %v403_v54 = vmax.f32 %v401_v52, 0.0  ;;  %v404_v55 = vmax.f32 %v402_v53, 0.0 }
 0x246   : > { %405 = vst [vmem:[%s818_s27] sm:$0xff] %v403_v54  ;;  %406 = vst [vmem:[%s818_s27 + $0x8] sm:$0xff] %v404_v55 }
 0x247 PF: > { %s415_s24 = smul.u32 %s685_s18, %s689_s19  ;;  %s423_s30 = sshll.u32 %s818_s27, 4  ;;  %s851_s30 = int_to_ptr.vmem [resolvable:$true] %s423_s30 }
 0x248   : > { %s408_s11 = scalar_lea.sflag [#allocation8], %s217_s8  ;;  %s607_s12 = scalar_lea.vmem %s851_s30, 256 }
 0x249   : > { %s520_s5 = sshll.u32 %s415_s24, 8  ;;  %p608_p7 = scmp.ne.s32.totalorder %s851_s30, %s607_s12 }
 0x24a   : > { %s421_s10 = scalar_lea.hbm %s906_s4, %s520_s5  ;;  %s706_s13 = smov [#allocation7]  }
 0x24b   : > { %p609_p9 = pnand %p608_p7, %p785_p6  ;;  %s611_s18 = sshll.u32 %s706_s13, 4  ;;  %s612_s18 = int_to_ptr.vmem [resolvable:$false] %s611_s18 }
 0x24c   : > { %s613_s19 = scalar_lea.vmem %s612_s18, 512  ;;  %p614_p11 = scmp.lt.s32.totalorder %s851_s30, %s612_s18 }
 0x24d   : > { %p610_p10 = pneg %p609_p9  ;;  %p615_p12 = scmp.lt.s32.totalorder %s613_s19, %s607_s12 }
 0x24f   : > { %p616_p13 = por %p615_p12, %p614_p11 }
 0x251   : > { %p617_p0 = pnand %p616_p13, %p610_p10 }
 0x253   : > { %620 = shalt.err (!%p617_p0)
}
 0x254   : > { %s621_s27 = scalar_lea.hbm %s421_s10, 256  ;;  %s625_s23 = scalar_lea.hbm %s906_s4, 512 }
 0x255   : > { %p622_p1 = scmp.ne.s32.totalorder %s421_s10, %s621_s27  ;;  %p626_p4 = scmp.lt.u32.totalorder %s421_s10, %s906_s4 }
 0x256   : > { %p627_p5 = scmp.lt.u32.totalorder %s625_s23, %s621_s27  ;;  %p629_p9 = scmp.lt.u32.totalorder %s621_s27, %s421_s10 }
 0x257   : > { %p623_p2 = pnand %p622_p1, %p785_p6 }
 0x258   : > { %p628_p7 = por %p627_p5, %p626_p4 }
 0x259   : > { %p624_p3 = pneg %p623_p2 }
 0x25a   : > { %p630_p11 = por %p629_p9, %p628_p7 }
 0x25c   : > { %p631_p10 = pnand %p630_p11, %p624_p3 }
 0x25e   : > { %634 = shalt.err (!%p631_p10)
}
 0x25f   : > { %530 = dma.vmem_to_hbm [thread:$0]  (%p785_p6), %s851_s30, 256, %s421_s10, %s408_s11  }
 0x260 PF: > { %p536_p12 = scmp.ge.s32.totalorder %s701_s22, 2  ;;  %s435_s6 = sand.u32 1, %s673_s15  }
 0x261   : > { %s436_s9 = scalar_lea.sflag [#allocation8], %s435_s6 }
 0x262   : > { %p533_p13 = pnand %p536_p12, %p792_p8 }
 0x264   : > { %668 = dma.done.wait (!%p533_p13), %s436_s9, 256  }
 0x265   : > { %670 = vsyncadd (!%p533_p13), %s436_s9, 4294967040  ;;  %s17_s22 = sadd.s32 1, %s701_s22   ;;  %s909_s15 = smov %s677_s16 }
 0x266   : > { %p14_p0 = scmp.ge.s32.totalorder %s17_s22, 6   ;;  %s910_s16 = smov %s681_s17 }
 0x267   : > { %s911_s17 = smov %s801_s7  ;;  %s912_s18 = smov %s693_s20 }
 0x268   : > { %s913_s19 = smov %s697_s21  ;;  %s914_s20 = smov %s917_s25 }
 0x269   : > { %s915_s21 = smov %s921_s26  ;;  %16 = sbr.rel (!%p14_p0) target bundleno = 5 (0x5), region = 89 }
 0x270   :  { %441 = vsyncpa [#allocation8], 1 }
 0x271   :  { %443 = vsyncpa [#allocation8 + $0x1], 1 }

</bundles_post_ra>
